<compile_context>
chip_gen: v5e
topology: v5e:2x2
jax: 0.10.0
libtpu: 0.0.40
codegen_flags: <defaults>
</compile_context>

<pallas_src>
import functools
import math

import jax
import jax.numpy as jnp
from jax.experimental import pallas as pl
from jax.experimental.pallas import tpu as pltpu

_LANE = 128
_ROWS = 8          # sublane depth of every streamed block (full f32 vreg fill)
_NCHUNKS = 2       # leading "parallel" grid axis (megacore split on v7x)
_DEFAULT_WEIGHTS = dict(level6=0.32, level5=0.08, level4=0.02,
                        level3=0.01, level2=0.005)


def _cdiv(a, b):
    return -(-a // b)


def _round_up(x, m):
    return _cdiv(x, m) * m


# ----------------------------------------------------------------------------
# Pallas kernel: fused, weighted charbonnier loss sum over all pyramid levels.
# ----------------------------------------------------------------------------
def _charbonnier_sum_kernel(p_ref, t_ref, w_ref, out_ref, acc_ref, *, q, eps):
    # p_ref, t_ref: (2, ROWS, TILE)  u-channel = [0], v-channel = [1].
    # w_ref:        (1 or ROWS, TILE) per-column / per-element weight
    #               (zero weight on padded columns keeps them inert).
    # out_ref:      (1, 128) per-chunk partial sum (lane-dense broadcast store).
    # acc_ref:      (ROWS, TILE) f32 VMEM accumulator.
    k = pl.program_id(1)

    @pl.when(k == 0)
    def _init():
        acc_ref[...] = jnp.zeros_like(acc_ref)

    du = p_ref[0].astype(jnp.float32) - t_ref[0].astype(jnp.float32)
    dv = p_ref[1].astype(jnp.float32) - t_ref[1].astype(jnp.float32)
    loss_map = (du * du + dv * dv + eps) ** q          # EUP: exp(q*log(.))
    acc_ref[...] += loss_map * w_ref[...]              # broadcasts (1,T)->(R,T)

    @pl.when(k == pl.num_programs(1) - 1)
    def _finish():
        total = jnp.sum(acc_ref[...])
        out_ref[...] = jnp.zeros_like(out_ref) + total


# ----------------------------------------------------------------------------
# Plain-JAX glue (pooling, flattening, weight folding).
# ----------------------------------------------------------------------------
def _adaptive_avg_pool2d(x, out_hw):
    # x: (B, C, H, W). Matches F.adaptive_avg_pool2d when H % h == 0, W % w == 0.
    B, C, H, W = x.shape
    h, w = out_hw
    assert H % h == 0 and W % w == 0, "level size must evenly divide target size"
    return x.reshape(B, C, h, H // h, w, W // w).mean(axis=(3, 5))


def _adaptive_max_pool2d(x, out_hw):
    # x: (B, H, W)
    B, H, W = x.shape
    h, w = out_hw
    assert H % h == 0 and W % w == 0, "level size must evenly divide target size"
    return x.reshape(B, h, H // h, w, W // w).max(axis=(2, 4))


def multi_level_charbonnier_loss(preds_dict, target, valid=None, *,
                                 q=0.2, eps=0.01, flow_div=20.0,
                                 weights=None, max_flow=float('inf'),
                                 resize_flow='downsample',
                                 scale_as_level=False, reduction='sum',
                                 vmem_budget_bytes=12 * 1024 * 1024):
    """JAX/Pallas equivalent of MultiLevelCharbonnierLoss.forward (defaults)."""
    if weights is None:
        weights = dict(_DEFAULT_WEIGHTS)
    assert resize_flow == 'downsample' and reduction == 'sum' and not scale_as_level
    # TODO(synk): resize_flow='upsample' (bilinear upsample of preds),
    # reduction='mean' and scale_as_level=True (non-default configs) are not
    # implemented here.

    B, c_org, H, W = target.shape
    assert c_org == 2

    # Keep native dtypes in HBM (bf16 preds/targets stream as bf16); the
    # kernel up-casts to f32 for compute.
    target_div = target / flow_div

    if valid is None:
        valid_full = None        # skip dead `mag` pass and all-ones mask stream
    else:
        mag = jnp.sqrt(jnp.sum(target.astype(jnp.float32) ** 2, axis=1))
        valid_full = ((valid >= 0.5) & (mag < max_flow)).astype(jnp.float32)

    level_names = list(weights.keys())

    def _as_list(p):
        return list(p) if isinstance(p, (tuple, list)) else [p]

    # mmflow quirk: final loss is divided by the prediction count of the LAST
    # level iterated.
    num_preds_final = len(_as_list(preds_dict[level_names[-1]]))

    wrows = 1 if valid_full is None else _ROWS
    p_segs, t_segs, w_segs = [], [], []
    total_cols = 0
    pad_correction = 0.0
    p_dtype = None
    t_dtype = target_div.dtype

    for level in level_names:
        cur_preds = _as_list(preds_dict[level])
        n_p = len(cur_preds)
        cur_weight = float(weights[level])
        b, c, h, w = cur_preds[0].shape
        assert c == 2 and b == B
        Ls = b * h * w
        seg_cols = _cdiv(Ls, _ROWS)
        Ls_pad = seg_cols * _ROWS

        # Pooled GT, channel-leading flat, computed once per level.
        cur_target = _adaptive_avg_pool2d(target_div, (h, w))        # (B,2,h,w)
        t_flat = jnp.transpose(cur_target, (1, 0, 2, 3)).reshape(2, Ls)
        if Ls_pad != Ls:
            t_flat = jnp.pad(t_flat, ((0, 0), (0, Ls_pad - Ls)))
        t_seg = t_flat.reshape(2, _ROWS, seg_cols)

        if valid_full is not None:
            cur_valid = _adaptive_max_pool2d(valid_full, (h, w)).reshape(Ls)

        for j, i_pred in enumerate(cur_preds):
            assert i_pred.shape == cur_preds[0].shape
            # mmflow accumulates loss_map across predictions in a level and
            # re-sums it after each one: prediction j gets multiplicity
            # (n_p - j).  Fold weight, multiplicity, 1/b, 1/num_preds.
            scale = cur_weight * float(n_p - j) / (float(b) * float(num_preds_final))

            p_flat = jnp.transpose(i_pred, (1, 0, 2, 3)).reshape(2, Ls)
            if p_dtype is None:
                p_dtype = p_flat.dtype
            if Ls_pad != Ls:
                p_flat = jnp.pad(p_flat, ((0, 0), (0, Ls_pad - Ls)))
            p_segs.append(p_flat.reshape(2, _ROWS, seg_cols))
            # TODO(synk): the pooled target is duplicated for each prediction
            # within a multi-pred level (minor; an index_map dedupe would need
            # tile-aligned segments).
            t_segs.append(t_seg)
            total_cols += seg_cols

            if valid_full is None:
                w_segs.append(jnp.full((1, seg_cols), scale, jnp.float32))
                # Zero-padded tail elements of this segment see the per-column
                # scale; remove their eps**q contribution analytically.
                pad_correction += (Ls_pad - Ls) * (eps ** q) * scale
            else:
                wf = cur_valid * jnp.float32(scale)
                if Ls_pad != Ls:
                    wf = jnp.pad(wf, (0, Ls_pad - Ls))
                w_segs.append(wf.reshape(_ROWS, seg_cols))

    # ---- lane-tile sizing from a per-generation VMEM budget -----------------
    item_p = jnp.dtype(p_dtype).itemsize
    item_t = jnp.dtype(t_dtype).itemsize
    bytes_per_col = (2 * (2 * _ROWS * item_p + 2 * _ROWS * item_t + wrows * 4)
                     + _ROWS * 4)                    # dbl-buffered inputs + acc
    tile_max = max(_LANE, (vmem_budget_bytes // bytes_per_col) // _LANE * _LANE)

    cols_per_chunk = _round_up(_cdiv(total_cols, _NCHUNKS), _LANE)
    tile = min(tile_max, cols_per_chunk)
    tiles_per_chunk = _cdiv(cols_per_chunk, tile)
    cols_per_chunk = tiles_per_chunk * tile
    total_cols_pad = _NCHUNKS * cols_per_chunk

    # Fold the final padding into the same concatenate (zero weight → inert).
    pad_cols = total_cols_pad - total_cols
    if pad_cols:
        p_segs.append(jnp.zeros((2, _ROWS, pad_cols), p_dtype))
        t_segs.append(jnp.zeros((2, _ROWS, pad_cols), t_dtype))
        w_segs.append(jnp.zeros((wrows, pad_cols), jnp.float32))

    P = jnp.concatenate(p_segs, axis=-1)      # (2, ROWS, total_cols_pad)
    T = jnp.concatenate(t_segs, axis=-1)      # (2, ROWS, total_cols_pad)
    Wm = jnp.concatenate(w_segs, axis=-1)     # (wrows, total_cols_pad)

    cost = pl.CostEstimate(
        flops=8 * _ROWS * total_cols_pad,
        transcendentals=2 * _ROWS * total_cols_pad,
        bytes_accessed=total_cols_pad * (2 * _ROWS * item_p + 2 * _ROWS * item_t
                                         + wrows * 4) + _NCHUNKS * _LANE * 4,
    )

    out = pl.pallas_call(
        functools.partial(_charbonnier_sum_kernel, q=q, eps=eps),
        out_shape=jax.ShapeDtypeStruct((1, _NCHUNKS * _LANE), jnp.float32),
        grid=(_NCHUNKS, tiles_per_chunk),
        in_specs=[
            pl.BlockSpec((2, _ROWS, tile),
                         lambda cc, k: (0, 0, cc * tiles_per_chunk + k)),
            pl.BlockSpec((2, _ROWS, tile),
                         lambda cc, k: (0, 0, cc * tiles_per_chunk + k)),
            pl.BlockSpec((wrows, tile),
                         lambda cc, k: (0, cc * tiles_per_chunk + k)),
        ],
        out_specs=pl.BlockSpec((1, _LANE), lambda cc, k: (0, cc)),
        scratch_shapes=[pltpu.VMEM((_ROWS, tile), jnp.float32)],
        compiler_params=pltpu.CompilerParams(
            dimension_semantics=("parallel", "arbitrary"),
            vmem_limit_bytes=32 * 1024 * 1024),
        cost_estimate=cost,
    )(P, T, Wm)

    partials = out.reshape(_NCHUNKS, _LANE)[:, 0]
    return partials.sum() - jnp.float32(pad_correction)


# ----------------------------------------------------------------------------
# Pure-JAX reference mirroring the PyTorch code exactly (including the quirky
# cumulative loss_map across multiple predictions per level).
# ----------------------------------------------------------------------------
def _reference(preds_dict, target, valid=None, *, q=0.2, eps=0.01,
               flow_div=20.0, weights=None, max_flow=float('inf')):
    if weights is None:
        weights = dict(_DEFAULT_WEIGHTS)
    B, _, H, W = target.shape
    mag = jnp.sqrt(jnp.sum(target.astype(jnp.float32) ** 2, axis=1))
    if valid is None:
        valid_m = jnp.ones((B, H, W), jnp.float32)
    else:
        valid_m = ((valid >= 0.5) & (mag < max_flow)).astype(jnp.float32)
    target_div = target.astype(jnp.float32) / flow_div
    loss = jnp.float32(0.0)
    num_preds = 1
    for level, wgt in weights.items():
        cur_pred = preds_dict[level]
        if not isinstance(cur_pred, (tuple, list)):
            cur_pred = [cur_pred]
        num_preds = len(cur_pred)
        b, _, h, w = cur_pred[0].shape
        cur_target = _adaptive_avg_pool2d(target_div, (h, w))
        cur_valid = _adaptive_max_pool2d(valid_m, (h, w))
        loss_map = jnp.zeros((b, h, w), jnp.float32)
        for i_pred in cur_pred:
            diff = i_pred.astype(jnp.float32) - cur_target
            loss_map = loss_map + ((jnp.sum(diff * diff, axis=1) + eps) ** q) * cur_valid
            loss = loss + loss_map.sum() / b * wgt
    return loss / num_preds


if __name__ == "__main__":
    key = jax.random.PRNGKey(0)
    B, H, W = 2, 16, 16
    level_sizes = dict(level6=1, level5=2, level4=4, level3=8, level2=16)

    keys = jax.random.split(key, 8)
    target = jax.random.normal(keys[0], (B, 2, H, W), dtype=jnp.float32) * 5.0
    preds = {}
    for i, (lvl, s) in enumerate(level_sizes.items()):
        preds[lvl] = jax.random.normal(keys[1 + i], (B, 2, s, s), dtype=jnp.float32)
    # Exercise mmflow's multi-prediction (cumulative loss_map) path on level6.
    preds["level6"] = [preds["level6"],
                       jax.random.normal(keys[6], (B, 2, 1, 1), dtype=jnp.float32)]
    valid = (jax.random.uniform(keys[7], (B, H, W)) > 0.3).astype(jnp.float32)

    # Case 1: no valid mask (module default path).
    loss_nomask = jax.block_until_ready(multi_level_charbonnier_loss(preds, target))
    ref_nomask = _reference(preds, target)
    assert jnp.allclose(loss_nomask, ref_nomask, rtol=1e-4, atol=1e-5), \
        (loss_nomask, ref_nomask)

    # Case 2: with a valid mask.
    loss_mask = jax.block_until_ready(
        multi_level_charbonnier_loss(preds, target, valid))
    ref_mask = _reference(preds, target, valid)
    assert jnp.allclose(loss_mask, ref_mask, rtol=1e-4, atol=1e-5), \
        (loss_mask, ref_mask)

    print("KERNEL_OK")
</pallas_src>

<mosaic_0001>
module attributes {stable_mosaic.version = 11 : i64} {
  func.func @_charbonnier_sum_kernel(%arg0: i32, %arg1: i32, %arg2: memref<2x8x128xf32, #tpu.memory_space<vmem>>, %arg3: memref<2x8x128xf32, #tpu.memory_space<vmem>>, %arg4: memref<1x128xf32, #tpu.memory_space<vmem>>, %arg5: memref<1x128xf32, #tpu.memory_space<vmem>>, %arg6: memref<8x128xf32, #tpu.memory_space<vmem>>) attributes {dimension_semantics = [#tpu.dimension_semantics<parallel>, #tpu.dimension_semantics<arbitrary>], iteration_bounds = array<i64: 2, 1>, scalar_prefetch = 0 : i64, scratch_operands = 1 : i64, tpu.core_type = #tpu.core_type<tc>, window_params = [{transform_indices = @transform_0, window_bounds = array<i64: 2, 8, 128>}, {transform_indices = @transform_1, window_bounds = array<i64: 2, 8, 128>}, {transform_indices = @transform_2, window_bounds = array<i64: 1, 128>}, {transform_indices = @transform_3, window_bounds = array<i64: 1, 128>}]} {
    %c0_i32 = arith.constant 0 : i32
    %0 = arith.cmpi eq, %arg1, %c0_i32 : i32
    %1 = arith.extui %0 : i1 to i32
    %c0_i32_0 = arith.constant 0 : i32
    %2 = arith.cmpi ne, %1, %c0_i32_0 : i32
    scf.if %2 {
      %cst_20 = arith.constant 0.000000e+00 : f32
      %29 = vector.broadcast %cst_20 : f32 to vector<8x128xf32>
      %c0_21 = arith.constant 0 : index
      %c0_22 = arith.constant 0 : index
      %30 = vector.load %arg6[%c0_21, %c0_22] : memref<8x128xf32, #tpu.memory_space<vmem>>, vector<8x128xf32>
      tpu.vector_store %arg6[%c0_21, %c0_22], %29 {strides = array<i32>} : memref<8x128xf32, #tpu.memory_space<vmem>>, vector<8x128xf32>,
    } else {
    }
    %c0 = arith.constant 0 : index
    %c0_1 = arith.constant 0 : index
    %c0_2 = arith.constant 0 : index
    %3 = vector.load %arg2[%c0, %c0_1, %c0_2] : memref<2x8x128xf32, #tpu.memory_space<vmem>>, vector<1x8x128xf32>
    %4 = vector.shape_cast %3 : vector<1x8x128xf32> to vector<8x128xf32>
    %c0_3 = arith.constant 0 : index
    %c0_4 = arith.constant 0 : index
    %c0_5 = arith.constant 0 : index
    %5 = vector.load %arg3[%c0_3, %c0_4, %c0_5] : memref<2x8x128xf32, #tpu.memory_space<vmem>>, vector<1x8x128xf32>
    %6 = vector.shape_cast %5 : vector<1x8x128xf32> to vector<8x128xf32>
    %7 = arith.subf %4, %6 : vector<8x128xf32>
    %c1 = arith.constant 1 : index
    %c0_6 = arith.constant 0 : index
    %c0_7 = arith.constant 0 : index
    %8 = vector.load %arg2[%c1, %c0_6, %c0_7] : memref<2x8x128xf32, #tpu.memory_space<vmem>>, vector<1x8x128xf32>
    %9 = vector.shape_cast %8 : vector<1x8x128xf32> to vector<8x128xf32>
    %c1_8 = arith.constant 1 : index
    %c0_9 = arith.constant 0 : index
    %c0_10 = arith.constant 0 : index
    %10 = vector.load %arg3[%c1_8, %c0_9, %c0_10] : memref<2x8x128xf32, #tpu.memory_space<vmem>>, vector<1x8x128xf32>
    %11 = vector.shape_cast %10 : vector<1x8x128xf32> to vector<8x128xf32>
    %12 = arith.subf %9, %11 : vector<8x128xf32>
    %13 = arith.mulf %7, %7 : vector<8x128xf32>
    %14 = arith.mulf %12, %12 : vector<8x128xf32>
    %15 = arith.addf %13, %14 : vector<8x128xf32>
    %cst = arith.constant 0.00999999977 : f32
    %16 = vector.broadcast %cst : f32 to vector<8x128xf32>
    %17 = arith.addf %15, %16 : vector<8x128xf32>
    %cst_11 = arith.constant 2.000000e-01 : f32
    %18 = vector.broadcast %cst_11 : f32 to vector<8x128xf32>
    %19 = math.powf %17, %18 : vector<8x128xf32>
    %c0_12 = arith.constant 0 : index
    %c0_13 = arith.constant 0 : index
    %20 = vector.load %arg6[%c0_12, %c0_13] : memref<8x128xf32, #tpu.memory_space<vmem>>, vector<8x128xf32>
    %c0_14 = arith.constant 0 : index
    %c0_15 = arith.constant 0 : index
    %21 = vector.load %arg4[%c0_14, %c0_15] : memref<1x128xf32, #tpu.memory_space<vmem>>, vector<1x128xf32>
    %22 = vector.broadcast %21 : vector<1x128xf32> to vector<8x128xf32>
    %23 = arith.mulf %19, %22 : vector<8x128xf32>
    %24 = arith.addf %20, %23 : vector<8x128xf32>
    %c0_16 = arith.constant 0 : index
    %c0_17 = arith.constant 0 : index
    %25 = vector.load %arg6[%c0_16, %c0_17] : memref<8x128xf32, #tpu.memory_space<vmem>>, vector<8x128xf32>
    tpu.vector_store %arg6[%c0_16, %c0_17], %24 {strides = array<i32>} : memref<8x128xf32, #tpu.memory_space<vmem>>, vector<8x128xf32>,
    %c0_i32_18 = arith.constant 0 : i32
    %26 = arith.cmpi eq, %arg1, %c0_i32_18 : i32
    %27 = arith.extui %26 : i1 to i32
    %c0_i32_19 = arith.constant 0 : i32
    %28 = arith.cmpi ne, %27, %c0_i32_19 : i32
    scf.if %28 {
      %c0_20 = arith.constant 0 : index
      %c0_21 = arith.constant 0 : index
      %29 = vector.load %arg6[%c0_20, %c0_21] : memref<8x128xf32, #tpu.memory_space<vmem>>, vector<8x128xf32>
      %30 = vector.shape_cast %29 : vector<8x128xf32> to vector<1x8x128xf32>
      %cst_22 = arith.constant dense<0.000000e+00> : vector<1xf32>
      %31 = vector.multi_reduction <add>, %30, %cst_22 [1, 2] : vector<1x8x128xf32> to vector<1xf32>
      %32 = vector.shape_cast %31 : vector<1xf32> to vector<1x1x1xf32>
      %33 = vector.extract %32[0, 0, 0] : f32 from vector<1x1x1xf32>
      %cst_23 = arith.constant 0.000000e+00 : f32
      %34 = vector.broadcast %cst_23 : f32 to vector<1x128xf32>
      %35 = vector.broadcast %33 : f32 to vector<1x128xf32>
      %36 = arith.addf %34, %35 : vector<1x128xf32>
      %c0_24 = arith.constant 0 : index
      %c0_25 = arith.constant 0 : index
      %37 = vector.load %arg5[%c0_24, %c0_25] : memref<1x128xf32, #tpu.memory_space<vmem>>, vector<1x128xf32>
      tpu.vector_store %arg5[%c0_24, %c0_25], %36 {strides = array<i32>} : memref<1x128xf32, #tpu.memory_space<vmem>>, vector<1x128xf32>,
    } else {
    }
    return
  }
  func.func @transform_0(%arg0: i32, %arg1: i32) -> (i32, i32, i32) {
    %c1_i32 = arith.constant 1 : i32
    %0 = arith.muli %arg0, %c1_i32 : i32
    %1 = arith.addi %0, %arg1 : i32
    %c0_i32 = arith.constant 0 : i32
    %c0_i32_0 = arith.constant 0 : i32
    %c0_i32_1 = arith.constant 0 : i32
    return %c0_i32, %c0_i32_0, %1 : i32, i32, i32
  }
  func.func @transform_1(%arg0: i32, %arg1: i32) -> (i32, i32, i32) {
    %c1_i32 = arith.constant 1 : i32
    %0 = arith.muli %arg0, %c1_i32 : i32
    %1 = arith.addi %0, %arg1 : i32
    %c0_i32 = arith.constant 0 : i32
    %c0_i32_0 = arith.constant 0 : i32
    %c0_i32_1 = arith.constant 0 : i32
    return %c0_i32, %c0_i32_0, %1 : i32, i32, i32
  }
  func.func @transform_2(%arg0: i32, %arg1: i32) -> (i32, i32) {
    %c1_i32 = arith.constant 1 : i32
    %0 = arith.muli %arg0, %c1_i32 : i32
    %1 = arith.addi %0, %arg1 : i32
    %c0_i32 = arith.constant 0 : i32
    %c0_i32_0 = arith.constant 0 : i32
    return %c0_i32, %1 : i32, i32
  }
  func.func @transform_3(%arg0: i32, %arg1: i32) -> (i32, i32) {
    %c0_i32 = arith.constant 0 : i32
    %c0_i32_0 = arith.constant 0 : i32
    return %c0_i32, %arg0 : i32, i32
  }
}

</mosaic_0001>

<bundles_post_ra>
// kernel: tpu_custom_call.1
= control target key start
LH: loop header
LB: loop body
LE: loop exit
PB: predicated region body
PF: predicated region fallthrough
CT: control target
= control target key end

     0   :  { %s988_s0 = inlined_call_operand.hbm [shape: f32[2,8,256], index: 0, kind: input, shape index: {}]   ;;  %s989_s1 = inlined_call_operand.hbm [shape: f32[2,8,256], index: 1, kind: input, shape index: {}]   ;;  %s990_s2 = inlined_call_operand.hbm [shape: f32[1,256], index: 2, kind: input, shape index: {}]   ;;  %s991_s3 = inlined_call_operand.hbm [shape: f32[1,256], index: 3, kind: output, shape index: {}]  }
   0x1   :  { %998 = sst [smem:[#allocation19_spill]] %s989_s1 }
   0x2   :  { %8 = vsyncpa [#allocation4], 0 }
   0x3   :  { %10 = vsyncpa [#allocation4 + $0x1], 0 }
   0x4   :  { %11 = vsyncpa [#allocation7], 0 }
   0x5   :  { %13 = vsyncpa [#allocation7 + $0x1], 0 }
   0x6   :  { %14 = vsyncpa [#allocation5], 0 }
   0x7   :  { %16 = vsyncpa [#allocation5 + $0x1], 0  ;;  %s824_s12 = smov 0   ;;  %s826_s13 = smov 0  }
   0x8   :  { %s828_s14 = smov 0   ;;  %s830_s15 = smov 0  }
   0x9   :  { %s832_s16 = smov 0   ;;  %s834_s17 = smov 0  }
   0xa LB: > { %999 = sst [smem:[#allocation13_spill]] %s779_s12  ;;  %s855_s18 = sadd.s32 4294967295, %s799_s17   ;;  %s799_s17 = sphi %s834_s17, %s22_s17   ;;  %s795_s16 = sphi %s832_s16, %s1022_s16   ;;  %s791_s15 = sphi %s830_s15, %s1021_s15   ;;  %s787_s14 = sphi %s828_s14, %s1020_s14   ;;  %s783_s13 = sphi %s826_s13, %s1019_s13   ;;  %s779_s12 = sphi %s824_s12, %s1018_s12  }
   0xb   : > { %1000 = sst [smem:[#allocation14_spill]] %s787_s14  ;;  %s458_s19 = sadd.s32 4294967294, %s799_s17  }
   0xc   : > { %1001 = sst [smem:[#allocation15_spill]] %s799_s17  ;;  %s34_s20 = sadd.s32 1, %s795_s16 }
   0xd   : > { %s43_s21 = sadd.s32 1, %s787_s14  ;;  %p36_p0 = scmp.ge.s32.totalorder %s34_s20, 2 }
   0xe   : > { %p50_p1 = scmp.ne.s32.totalorder %s787_s14, %s783_s13  ;;  %p51_p2 = scmp.eq.s32.totalorder %s799_s17, 0 }
   0xf   : > { %p56_p3 = scmp.ne.s32.totalorder %s783_s13, %s779_s12  ;;  %s1024_s20 = smov (%p36_p0, %s34_s20), 0 }
  0x10   : > { %1002 = sst [smem:[#allocation16_spill]] %s1024_s20  ;;  %p867_p4 = por %p51_p2, %p50_p1 }
  0x11   : > { %p57_p5 = scmp.eq.s32.totalorder %s855_s18, 0  ;;  %s40_s23 = ssub.s32 %s795_s16, %s1024_s20 }
  0x12   : > { %p136_p6 = scmp.eq.s32.totalorder %s855_s18, 1  ;;  %p41_p7 = scmp.eq.s32.totalorder %s40_s23, 0 }
  0x13   : > { %p875_p8 = por %p57_p5, %p56_p3  ;;  %p142_p10 = scmp.eq.s32.totalorder %s458_s19, 1 }
  0x14   : > { %p879_p9 = por %p136_p6, %p50_p1  ;;  %p460_p12 = scmp.ge.s32.totalorder %s799_s17, 2 }
  0x15   : > { %s884_s26 = scalar_select %p41_p7, %s787_s14, %s43_s21  }
  0x16   : > { %p886_p11 = por %p142_p10, %p56_p3  ;;  %p567_p13 = scmp.lt.s32.totalorder %s799_s17, 2 }
  0x17   : > { %1006 = sst [smem:[#allocation17_spill]] %s884_s26  ;;  %s893_s28 = sand.u32 1, %s787_s14  }
  0x18   : > { %s1007_s27 = scalar_select %p886_p11, 1, 0 }
  0x19   : > { %s461_s29 = sshll.u32 %s893_s28, 4  ;;  %s462_s30 = sshll.u32 %s795_s16, 3 }
  0x1a   : > { %1008 = sst [smem:[#allocation18_spill]] %s1007_s27  ;;  %p899_p0 = pnand %p567_p13, %p867_p4 }
  0x1b   : > { %s184_s5 = sand.u32 1, %s799_s17   ;;  %s1010_s1 = sld [smem:[#allocation19_spill]] }
  0x1c   : > { %s188_s9 = scalar_lea.vmem [#allocation6], %s461_s29  ;;  %p465_p1 = scmp.ge.s32.totalorder %s799_s17, 1 }
  0x1d   : > { %s196_s10 = sshll.u32 %s188_s9, 4  ;;  %s185_s19 = scalar_lea.sflag [#allocation7], %s184_s5  ;;  %s197_s10 = int_to_ptr.vmem [resolvable:$true] %s196_s10 }
  0x1e   : > { %s801_s21 = smov 256   ;;  %s802_s22 = smov 128  }
  0x1f   : > { %s803_s23 = smov 8   ;;  %p222_p2 = scmp.lt.s32.totalorder %s799_s17, 3 }
  0x20   : > { %s171_s9 = scalar_lea.hbm %s988_s0, %s462_s30  ;;  %s163_s5 = scalar_lea.sflag [#allocation4], %s893_s28 }
  0x21   : > { %s193_s8 = scalar_lea.hbm %s1010_s1, %s462_s30  ;;  %p911_p3 = pnand %p465_p1, %p222_p2 }
  0x22   : > { %s194_s11 = sshll.u32 %s193_s8, 4  ;;  %s166_s1 = scalar_lea.vmem [#allocation3], %s461_s29  ;;  %s195_s11 = int_to_ptr.hbm [resolvable:$true] %s194_s11 }
  0x23   : > { %559 = dma.hbm_to_vmem [thread:$0]  (!%p899_p0), %s195_s11, 256, %s197_s10, %s185_s19, %s801_s21, %s802_s22, %s803_s23  }
  0x24   : > { %s174_s20 = sshll.u32 %s166_s1, 4  ;;  %s172_s26 = sshll.u32 %s171_s9, 4  ;;  %s175_s20 = int_to_ptr.vmem [resolvable:$true] %s174_s20  ;;  %s173_s26 = int_to_ptr.hbm [resolvable:$true] %s172_s26 }
  0x25   : > { %556 = dma.hbm_to_vmem [thread:$0]  (!%p899_p0), %s173_s26, 256, %s175_s20, %s163_s5, %s801_s21, %s802_s22, %s803_s23  }
  0x26   : > { %s213_s11 = scalar_lea.hbm %s990_s2, %s795_s16  ;;  %s209_s17 = scalar_lea.vmem [#allocation8], %s893_s28 }
  0x27   : > { %s217_s27 = sshll.u32 %s209_s17, 4  ;;  %s215_s12 = sshll.u32 %s213_s11, 4  ;;  %s218_s27 = int_to_ptr.vmem [resolvable:$true] %s217_s27  ;;  %s216_s12 = int_to_ptr.hbm [resolvable:$true] %s215_s12 }
  0x28   : > { %562 = dma.hbm_to_vmem [thread:$0]  (!%p899_p0), %s216_s12, 16, %s218_s27, %s185_s19  }
  0x29   : > { %226 = sbr.rel (%p911_p3) target bundleno = 301 (0x12d), region = 32  ;;  %s931_s1 = sand.u32 (!%p911_p3), 1, %s783_s13  }
  0x2a   : > { %s466_s20 = sshll.u32 (!%p911_p3), %s931_s1, 4  ;;  %s229_s26 = scalar_lea.sflag (!%p911_p3), [#allocation4], %s931_s1 }
  0x2b   : > { %s232_s14 = scalar_lea.vmem (!%p911_p3), [#allocation3], %s466_s20 }
  0x2e   : > { %766 = dma.done.wait (%p875_p8), %s229_s26, 256  }
  0x2f   : > { %768 = vsyncadd (%p875_p8), %s229_s26, 4294967040  ;;  %s238_s12 = sand.u32 1, %s855_s18   ;;  %s242_s27 = scalar_lea.vmem [#allocation6], %s466_s20 }
  0x30   : > { %s239_s17 = scalar_lea.sflag [#allocation7], %s238_s12 }
  0x31   : > { %770 = dma.done.wait (%p875_p8), %s239_s17, 272  }
  0x32   : > { %772 = vsyncadd (%p875_p8), %s239_s17, 4294967024  ;;  %v291_v0 = vld [vmem:[%s232_s14] sm:$0xff]  ;;  %v468_v2 = vld [vmem:[%s232_s14 + $0x8] sm:$0xff]  ;;  %s251_s28 = scalar_lea.vmem [#allocation8], %s931_s1  ;;  %s337_s29 = scalar_lea.hbm %s991_s3, %s791_s15 }
  0x33   : > { %v292_v1 = vld [vmem:[%s242_s27] sm:$0xff]  ;;  %v469_v4 = vld [vmem:[%s242_s27 + $0x8] sm:$0xff]  ;;  %s282_s30 = scalar_lea.vmem [#allocation9], %s931_s1  ;;  %s341_s19 = sshll.u32 %s337_s29, 4  ;;  %s342_s19 = int_to_ptr.hbm [resolvable:$true] %s341_s19 }
  0x34   : > { %v293_v3 = vsub.f32 %v291_v0, %v292_v1  ;;  %v298_v5 = vsub.f32 %v468_v2, %v469_v4  ;;  %v620_v51 = vld [vmem:[%s251_s28] ss:$0 sm:$0xff]  ;;  %s339_s4 = sshll.u32 %s282_s30, 4  ;;  %s329_s22 = scalar_lea.sflag [#allocation5], %s931_s1  ;;  %s340_s4 = int_to_ptr.vmem [resolvable:$true] %s339_s4 }
  0x35   : > { %s727_s23 = sshra.s32 %s342_s19, 4  ;;  %s733_s15 = scalar_lea.hbm %s991_s3, 2  ;;  %s728_s23 = int_to_ptr.hbm [resolvable:$true] %s727_s23 }
  0x36   : > { %v299_v6 = vmul.f32 %v293_v3, %v293_v3  ;;  %v300_v7 = vmul.f32 %v298_v5, %v298_v5  ;;  %s729_s6 = scalar_lea.hbm %s728_s23, 1  ;;  %p734_p7 = scmp.lt.s32.totalorder %s728_s23, %s991_s3 }
  0x37   : > { %p730_p4 = scmp.ne.s32.totalorder %s728_s23, %s729_s6  ;;  %p735_p8 = scmp.lt.s32.totalorder %s733_s15, %s729_s6 }
  0x38   : > { %v301_v8 = vadd.f32 %v300_v7, %v299_v6 }
  0x39   : > { %p731_p5 = pnand %p730_p4, %p879_p9  ;;  %p736_p10 = por %p735_p8, %p734_p7 }
  0x3a   : > { %v302_v9 = vadd.f32 0.01, %v301_v8 }
  0x3b   : > { %p732_p6 = pneg %p731_p5 }
  0x3c   : > { %v476_v10 = vand.u32 2147483647, %v302_v9  ;;  %vm523_vm5 = vcmp.lt.f32.partialorder %v302_v9, 0  ;;  %vm524_vm6 = vcmp.eq.f32.partialorder %v302_v9, 0  ;;  %vm536_vm8 = vcmp.ne.f32.partialorder %v302_v9, %v302_v9 }
  0x3d   : > { %vm525_vm9 = vcmp.eq.f32.partialorder %v302_v9, 1065353216  ;;  %p737_p13 = pnand %p736_p10, %p732_p6 }
  0x3e   : > { %v482_v11 = vand.u32 8388607, %v476_v10  ;;  %v478_v18 = vand.u32 2139095040, %v476_v10  ;;  %vm516_vm1 = vweird.f32 %v476_v10  ;;  %vm515_vm2 = vcmp.lt.f32.partialorder %v476_v10, 0.0 }
  0x3f   : > { %vm514_vm3 = vcmp.eq.f32.partialorder %v476_v10, 0.0  ;;  %vm513_vm4 = vcmp.eq.f32.partialorder %v476_v10, 1.0  ;;  %vm528_vm7 = vcmp.eq.f32.partialorder %v476_v10, 2139095040 }
  0x40   : > { %v483_v12 = vor.u32 8388608, %v482_v11  ;;  %v479_v22 = vshrl.u32 %v478_v18, 23 }
  0x42   : > { %v485_v13 = vand.u32 8388607, %v483_v12  ;;  %v541_v27 = vadd.s32 4294967169, %v479_v22 }
  0x44   : > { %v486_v14 = vor.u32 1065353216, %v485_v13  ;;  %v490_v32 = vadd.s32 1, %v541_v27 }
  0x46   : > { %vm487_vm0 = vcmp.ge.f32.partialorder %v486_v14, 1.4142135  ;;  %v488_v15 = vmul.f32 0.5, %v486_v14 }
  0x47   : > { %v491_v37 = vsel %vm487_vm0, %v490_v32, %v541_v27 }
  0x48   : > { %v489_v16 = vsel %vm487_vm0, %v488_v15, %v486_v14  ;;  %v511_v40 = vcvt.s32.f32 %v491_v37 }
  0x49   : > { %v542_v17 = vadd.f32 -1.0, %v489_v16 }
  0x4b   : > { %v493_v19 = vmul.f32 %v542_v17, %v542_v17 }
  0x4d   : > { %v494_v20 = vmul.f32 0.12621109, %v493_v19  ;;  %v496_v21 = vmul.f32 -0.20706727, %v493_v19 }
  0x4f   : > { %v495_v23 = vadd.f32 0.21545328, %v494_v20  ;;  %v497_v24 = vadd.f32 -0.23896284, %v496_v21 }
  0x51   : > { %v498_v25 = vmul.f32 %v495_v23, %v493_v19  ;;  %v500_v26 = vmul.f32 %v497_v24, %v493_v19 }
  0x53   : > { %v499_v28 = vadd.f32 0.28795174, %v498_v25  ;;  %v501_v29 = vadd.f32 -0.3607037, %v500_v26 }
  0x55   : > { %v502_v30 = vmul.f32 %v499_v28, %v493_v19  ;;  %v504_v31 = vmul.f32 %v501_v29, %v493_v19 }
  0x57   : > { %v503_v33 = vadd.f32 0.48090908, %v502_v30  ;;  %v505_v34 = vadd.f32 -0.72134733, %v504_v31 }
  0x59   : > { %v506_v35 = vmul.f32 %v503_v33, %v493_v19  ;;  %v508_v36 = vmul.f32 %v542_v17, %v505_v34 }
  0x5b   : > { %v507_v38 = vadd.f32 1.442695, %v506_v35 }
  0x5d   : > { %v509_v39 = vadd.f32 %v508_v36, %v507_v38 }
  0x5f   : > { %v510_v41 = vmul.f32 %v542_v17, %v509_v39 }
  0x61   : > { %v512_v42 = vadd.f32 %v511_v40, %v510_v41 }
  0x63   : > { %v517_v43 = vsel %vm516_vm1, %v476_v10, %v512_v42 }
  0x64   : > { %v518_v44 = vsel %vm515_vm2, nan, %v517_v43 }
  0x65   : > { %v519_v45 = vsel %vm514_vm3, -inf, %v518_v44 }
  0x66   : > { %v520_v46 = vsel %vm513_vm4, 0.0, %v519_v45 }
  0x67   : > { %v521_v47 = vmul.f32 0.2, %v520_v46 }
  0x69   : > { %621 = vpow2.f32 %v521_v47 }
  0x6f   : > { %v622_v48 = vpop.eup %621 }
  0x70   : > { %v529_v49 = vsel %vm523_vm5, 2143289344, %v622_v48 }
  0x71   : > { %v530_v50 = vsel %vm524_vm6, 0, %v529_v49 }
  0x72   : > { %v535_v52 = vsel %vm528_vm7, 2139095040, %v530_v50 }
  0x73   : > { %v539_v53 = vsel %vm536_vm8, 2143289344, %v535_v52 }
  0x74   : > { %v540_v54 = vsel %vm525_vm9, 1065353216, %v539_v53 }
  0x75   : > { %v309_v55 = vmul.f32 %v620_v51, %v540_v54 }
  0x77   : > { %316 = vadd.xlane.f32.xlu0 %v309_v55 }
  0xea   : > { %v317_v56 = vpop.xlane.xlu0 %316 }
  0xeb   : > { %v318_v57 = vrot.slane %v317_v56, 4 }
  0xed   : > { %v319_v58 = vadd.f32 %v318_v57, %v317_v56 }
  0xef   : > { %v320_v59 = vrot.slane %v319_v58, 2 }
  0xf1   : > { %v321_v60 = vadd.f32 %v320_v59, %v319_v58 }
  0xf3   : > { %v322_v61 = vrot.slane %v321_v60, 1 }
  0xf5   : > { %v323_v62 = vadd.f32 %v322_v61, %v321_v60 }
  0xf7   : > { %543 = vpush %v323_v62 }
 0x128   : > { %s544_s21 = spop %543 }
 0x129   : > { %v325_v63 = vstv %s544_s21 }
 0x12a   : > { %327 = vst [vmem:[%s282_s30] sm:$0x1] %v325_v63 }
 0x12b   : > { %740 = shalt.err (!%p737_p13)
}
 0x12c   : > { %551 = dma.vmem_to_hbm [thread:$0]  (%p879_p9), %s340_s4, 16, %s342_s19, %s329_s22  }
 0x12d PF: > { %s1012_s10 = sld [smem:[#allocation13_spill]]  ;;  %p564_p0 = pnand %p460_p12, %p886_p11 }
 0x12e   : > { %s1014_s1 = sld [smem:[#allocation15_spill]] }
 0x12f   : > { %p565_p1 = pneg %p564_p0 }
 0x133   : > { %s353_s20 = sand.u32 1, %s1012_s10  }
 0x134   : > { %s354_s26 = scalar_lea.sflag [#allocation5], %s353_s20 }
 0x135   : > { %774 = dma.done.wait (%p565_p1), %s354_s26, 16  }
 0x136   : > { %776 = vsyncadd (%p565_p1), %s354_s26, 4294967280  ;;  %s22_s17 = sadd.s32 1, %s1014_s1   ;;  %s1015_s14 = sld [smem:[#allocation14_spill]] }
 0x137   : > { %p19_p2 = scmp.ge.s32.totalorder %s22_s17, 4   ;;  %s1016_s27 = sld [smem:[#allocation17_spill]] }
 0x138   : > { %s1017_s25 = sld [smem:[#allocation16_spill]]  ;;  %s1018_s12 = smov %s783_s13 }
 0x139   : > { %s1021_s15 = smov %s795_s16 }
 0x13a   :  { %21 = sbr.rel (!%p19_p2) target bundleno = 10 (0xa), region = 111 }
 0x13c   : > { %s1019_s13 = smov %s1015_s14 }
 0x13d   : > { %s1020_s14 = smov %s1016_s27 }
 0x13e   : > { %s1022_s16 = smov %s1017_s25 }
 0x13f   :  { %359 = vsyncpa [#allocation4], 1 }
 0x140   :  { %361 = vsyncpa [#allocation4 + $0x1], 1 }
 0x141   :  { %362 = vsyncpa [#allocation7], 1 }
 0x142   :  { %364 = vsyncpa [#allocation7 + $0x1], 1 }
 0x143   :  { %365 = vsyncpa [#allocation5], 1 }
 0x144   :  { %367 = vsyncpa [#allocation5 + $0x1], 1 }

</bundles_post_ra>
